<compile_context>
chip_gen: v7x
topology: tpu7x:2x2x1
jax: 0.10.0
libtpu: 0.0.40
codegen_flags: <defaults>
</compile_context>

<pallas_src>
import functools

import jax
import jax.numpy as jnp
from jax.experimental import pallas as pl
from jax.experimental.pallas import tpu as pltpu


def _round_up(x, m):
    return ((x + m - 1) // m) * m


def _pick_tile(padded, cap, align):
    """Largest multiple of `align` that divides `padded` and is <= cap."""
    best = align
    cap = min(cap, padded)
    t = align
    while t <= cap:
        if padded % t == 0:
            best = t
        t += align
    return best


def _linear_kernel_accout(x_ref, w_ref, b_ref, o_ref, *, compute_dtype):
    """x@W+b with the f32 output block used directly as the K-accumulator.

    o_ref's block index ignores the k grid axis, so it stays VMEM-resident
    across the reduction (no scratch, no final copy).  o_ref may be narrower
    than the W tile (last, partial output-column tile) -> slice the value.
    """
    k = pl.program_id(2)
    n = o_ref.shape[-1]

    @pl.when(k == 0)
    def _():
        o_ref[...] = jnp.broadcast_to(
            b_ref[...][:, :n].astype(jnp.float32), o_ref.shape)

    x = x_ref[...]
    w = w_ref[...]
    if compute_dtype is not None:          # in-kernel cast (no extra HBM pass)
        x = x.astype(compute_dtype)
        w = w.astype(compute_dtype)
    contrib = jnp.dot(x, w, preferred_element_type=jnp.float32)
    o_ref[...] += contrib[:, :n]


def _linear_kernel_scratch(x_ref, w_ref, b_ref, o_ref, acc_ref, *, compute_dtype):
    """Same computation, f32 VMEM scratch accumulator (for non-f32 outputs)."""
    k = pl.program_id(2)

    @pl.when(k == 0)
    def _():
        acc_ref[...] = jnp.broadcast_to(
            b_ref[...].astype(jnp.float32), acc_ref.shape)

    x = x_ref[...]
    w = w_ref[...]
    if compute_dtype is not None:
        x = x.astype(compute_dtype)
        w = w.astype(compute_dtype)
    acc_ref[...] += jnp.dot(x, w, preferred_element_type=jnp.float32)

    @pl.when(k == pl.num_programs(2) - 1)
    def _():
        n = o_ref.shape[-1]
        o_ref[...] = acc_ref[...][:, :n].astype(o_ref.dtype)


def pallas_linear_first_cols(x2d, w, b, n_out, *, compute_dtype=None):
    """Computes (x2d @ w + b)[:, :n_out] with a tiled MXU kernel.

    x2d: (M, K), w: (K, H), b: (H,).  Only the first round_up(n_out, 128)
    columns of w/b are ever read (fused into the BlockSpec index maps).
    """
    M, K = x2d.shape
    Kw, H = w.shape
    assert K == Kw and b.shape == (H,)
    N = min(int(n_out), H)                      # torch slice clamps like this
    out_dtype = jnp.result_type(x2d.dtype, w.dtype, b.dtype)

    bf16_compute = (compute_dtype == jnp.bfloat16) or (x2d.dtype == jnp.bfloat16)
    m_align = 16 if bf16_compute else 8

    # Tile caps: double-buffered inputs + output + scratch stay ~8 MiB
    # (safe inside v5e/v6e 128 MiB and v7x 64 MiB physical VMEM).
    CAP_M, CAP_N, CAP_K = 256, 512, 1024

    # --- M axis: single full block when small (exempt from 8-alignment).
    if M <= CAP_M:
        M_pad, tm = M, M
    else:
        M_pad = _round_up(M, m_align)
        tm = _pick_tile(M_pad, CAP_M, m_align)

    # --- K axis: single full block when small (exempt from 128-alignment).
    if K <= CAP_K:
        K_pad, tk = K, K
    else:
        K_pad = _round_up(K, 128)
        tk = _pick_tile(K_pad, CAP_K, 128)

    # --- N axis (output columns actually computed).
    N_pad = _round_up(N, 128)
    if N_pad <= H:
        # Tile only the first N_pad columns of the full (unsliced) w -- no pad.
        Ncomp, tn, pad_cols = N_pad, _pick_tile(N_pad, CAP_N, 128), 0
    elif H <= CAP_N:
        # H below the 128-rounded N: a single full-width tile (tn == H) is
        # exempt from the 128 rule -> compute all H columns, no pad.
        Ncomp, tn, pad_cols = H, H, 0
    else:
        # Rare: must pad w's columns up to N_pad.
        Ncomp, tn, pad_cols = N_pad, _pick_tile(N_pad, CAP_N, 128), N_pad - H

    # --- v7x has 2 TensorCores: make sure a 'parallel' axis has >= 2 tiles.
    if (M_pad // tm) * (Ncomp // tn) == 1:
        if tn % 256 == 0:
            tn //= 2
        elif tm % (2 * m_align) == 0:
            tm //= 2

    # --- Padding only where unavoidable.
    pad_rows_w = K_pad - K
    w_in = jnp.pad(w, ((0, pad_rows_w), (0, pad_cols))) if (pad_rows_w or pad_cols) else w
    b2d = b.reshape(1, H)
    if pad_cols:
        b2d = jnp.pad(b2d, ((0, 0), (0, pad_cols)))
    if (M_pad, K_pad) != (M, K):
        x_in = jnp.pad(x2d, ((0, M_pad - M), (0, K_pad - K)))
    else:
        x_in = x2d

    grid = (M_pad // tm, Ncomp // tn, K_pad // tk)
    # If there is a single output-column tile we can write exactly N columns
    # (full-dim block, exempt from the 128 rule) -> no external output slice.
    single_j = grid[1] == 1
    out_cols = N if single_j else Ncomp
    tn_out = out_cols if single_j else tn

    if out_dtype == jnp.float32:
        kernel = functools.partial(_linear_kernel_accout, compute_dtype=compute_dtype)
        scratch = []
    else:
        kernel = functools.partial(_linear_kernel_scratch, compute_dtype=compute_dtype)
        scratch = [pltpu.VMEM((tm, tn), jnp.float32)]

    out = pl.pallas_call(
        kernel,
        out_shape=jax.ShapeDtypeStruct((M_pad, out_cols), out_dtype),
        grid_spec=pltpu.PrefetchScalarGridSpec(
            num_scalar_prefetch=0,
            grid=grid,
            in_specs=[
                pl.BlockSpec((tm, tk), lambda i, j, k: (i, k)),
                pl.BlockSpec((tk, tn), lambda i, j, k: (k, j)),
                pl.BlockSpec((1, tn), lambda i, j, k: (0, j)),
            ],
            out_specs=pl.BlockSpec((tm, tn_out), lambda i, j, k: (i, j)),
            scratch_shapes=scratch,
        ),
        compiler_params=pltpu.CompilerParams(
            dimension_semantics=("parallel", "parallel", "arbitrary"),
            vmem_limit_bytes=32 * 1024 * 1024,
        ),
    )(x_in, w_in, b2d)

    if out.shape != (M, N):
        out = out[:M, :N]
    return out


@functools.partial(
    jax.jit, static_argnames=("output_dim", "compute_dtype", "allow_xla_fallback"))
def model_wrapper_forward(x, w, b, output_dim, compute_dtype=None,
                          allow_xla_fallback=False):
    """Pallas equivalent of ModelWrapper.forward with model(x) = x @ W + b.

    x: (T, D) or (B, T, D).  Returns model(x)[:, -1, :output_dim].
    """
    if x.ndim == 2:
        x = x[None, ...]                         # torch unsqueeze(0)
    # Per-timestep affine model => only the last timestep contributes.
    x_last = x[:, -1, :]                         # (B, D)
    if allow_xla_fallback and (
            x_last.shape[0] * x_last.shape[1] * output_dim) < (1 << 18):
        # Latency-bound tiny problems: XLA's fused dot+add is faster than any
        # pallas_call launch.  Off by default so the kernel path is exercised.
        out_dtype = jnp.result_type(x.dtype, w.dtype, b.dtype)
        return (x_last @ w[:, :output_dim] + b[:output_dim]).astype(out_dtype)
    return pallas_linear_first_cols(x_last, w, b, output_dim,
                                    compute_dtype=compute_dtype)


if __name__ == "__main__":
    key = jax.random.PRNGKey(0)
    k1, k2, k3, k4, k5, k6 = jax.random.split(key, 6)

    # Case 1: small ModelWrapper shapes (B=2, T=8, D=32, H=32, output_dim=16).
    # Single-block path: no padding, no external slices, grid (1, 1, 1).
    B, T, D, H, OD = 2, 8, 32, 32, 16
    x = jax.random.normal(k1, (B, T, D), dtype=jnp.float32)
    w = jax.random.normal(k2, (D, H), dtype=jnp.float32) * 0.1
    b = jax.random.normal(k3, (H,), dtype=jnp.float32) * 0.1
    ref = (x[:, -1, :] @ w + b)[:, :OD]

    y = jax.block_until_ready(model_wrapper_forward(x, w, b, output_dim=OD))
    assert y.shape == (B, OD) and y.dtype == jnp.float32
    assert jnp.allclose(y, ref, atol=1e-4, rtol=1e-4)

    # bf16-compute path (f32 in HBM, cast inside the kernel, f32 accumulate).
    y_bf16 = jax.block_until_ready(
        model_wrapper_forward(x, w, b, output_dim=OD, compute_dtype=jnp.bfloat16))
    assert y_bf16.shape == (B, OD)
    assert jnp.allclose(y_bf16, ref, atol=5e-2, rtol=5e-2)

    # XLA fallback path for tiny problems (review item), off by default.
    y_fb = jax.block_until_ready(
        model_wrapper_forward(x, w, b, output_dim=OD, allow_xla_fallback=True))
    assert jnp.allclose(y_fb, ref, atol=1e-4, rtol=1e-4)

    # Case 2: larger shapes exercising the tiled path: K split into 2 tiles
    # (accumulation across k), output columns tiled 2x128 (both v7x cores),
    # full W passed with only its first 256 of 512 columns ever read.
    B2, T2, D2, H2, OD2 = 4, 4, 1536, 512, 200
    x2 = jax.random.normal(k4, (B2, T2, D2), dtype=jnp.float32)
    w2 = jax.random.normal(k5, (D2, H2), dtype=jnp.float32) * 0.02
    b2 = jax.random.normal(k6, (H2,), dtype=jnp.float32) * 0.1
    ref2 = (x2[:, -1, :] @ w2 + b2)[:, :OD2]
    y2 = jax.block_until_ready(model_wrapper_forward(x2, w2, b2, output_dim=OD2))
    assert y2.shape == (B2, OD2)
    assert jnp.allclose(y2, ref2, atol=2e-3, rtol=2e-3)

    print("KERNEL_OK")
</pallas_src>

<mosaic_0001>
module attributes {stable_mosaic.version = 11 : i64} {
  func.func @_linear_kernel_accout(%arg0: i32, %arg1: i32, %arg2: i32, %arg3: memref<2x32xf32, #tpu.memory_space<vmem>>, %arg4: memref<32x32xf32, #tpu.memory_space<vmem>>, %arg5: memref<1x32xf32, #tpu.memory_space<vmem>>, %arg6: memref<2x16xf32, #tpu.memory_space<vmem>>) attributes {dimension_semantics = [#tpu.dimension_semantics<parallel>, #tpu.dimension_semantics<parallel>, #tpu.dimension_semantics<arbitrary>], iteration_bounds = array<i64: 1, 1, 1>, scalar_prefetch = 0 : i64, scratch_operands = 0 : i64, tpu.core_type = #tpu.core_type<tc>, window_params = [{transform_indices = @transform_0, window_bounds = array<i64: 2, 32>}, {transform_indices = @transform_1, window_bounds = array<i64: 32, 32>}, {transform_indices = @transform_2, window_bounds = array<i64: 1, 32>}, {transform_indices = @transform_3, window_bounds = array<i64: 2, 16>}]} {
    %c0_i32 = arith.constant 0 : i32
    %0 = arith.cmpi eq, %arg2, %c0_i32 : i32
    %1 = arith.extui %0 : i1 to i32
    %c0_i32_0 = arith.constant 0 : i32
    %2 = arith.cmpi ne, %1, %c0_i32_0 : i32
    scf.if %2 {
      %c0_8 = arith.constant 0 : index
      %c0_9 = arith.constant 0 : index
      %10 = vector.load %arg5[%c0_8, %c0_9] : memref<1x32xf32, #tpu.memory_space<vmem>>, vector<1x32xf32>
      %11 = vector.extract_strided_slice %10 {offsets = [0, 0], sizes = [1, 16], strides = [1, 1]} : vector<1x32xf32> to vector<1x16xf32>
      %12 = vector.shape_cast %11 : vector<1x16xf32> to vector<1x16xf32>
      %13 = vector.broadcast %12 : vector<1x16xf32> to vector<2x16xf32>
      %c0_10 = arith.constant 0 : index
      %c0_11 = arith.constant 0 : index
      %14 = vector.load %arg6[%c0_10, %c0_11] : memref<2x16xf32, #tpu.memory_space<vmem>>, vector<2x16xf32>
      tpu.vector_store %arg6[%c0_10, %c0_11], %13 {strides = array<i32>} : memref<2x16xf32, #tpu.memory_space<vmem>>, vector<2x16xf32>,
    } else {
    }
    %c0 = arith.constant 0 : index
    %c0_1 = arith.constant 0 : index
    %3 = vector.load %arg3[%c0, %c0_1] : memref<2x32xf32, #tpu.memory_space<vmem>>, vector<2x32xf32>
    %c0_2 = arith.constant 0 : index
    %c0_3 = arith.constant 0 : index
    %4 = vector.load %arg4[%c0_2, %c0_3] : memref<32x32xf32, #tpu.memory_space<vmem>>, vector<32x32xf32>
    %cst = arith.constant dense<0.000000e+00> : vector<2x32xf32>
    %5 = tpu.matmul %3, %4, %cst {dimension_numbers = #tpu.dot_dimension_numbers<[1], [0], [0], [1], [0, 0, 1, 1], [], []>} : vector<2x32xf32>, vector<32x32xf32>, vector<2x32xf32> -> vector<2x32xf32>
    %c0_4 = arith.constant 0 : index
    %c0_5 = arith.constant 0 : index
    %6 = vector.load %arg6[%c0_4, %c0_5] : memref<2x16xf32, #tpu.memory_space<vmem>>, vector<2x16xf32>
    %7 = vector.extract_strided_slice %5 {offsets = [0, 0], sizes = [2, 16], strides = [1, 1]} : vector<2x32xf32> to vector<2x16xf32>
    %8 = arith.addf %6, %7 : vector<2x16xf32>
    %c0_6 = arith.constant 0 : index
    %c0_7 = arith.constant 0 : index
    %9 = vector.load %arg6[%c0_6, %c0_7] : memref<2x16xf32, #tpu.memory_space<vmem>>, vector<2x16xf32>
    tpu.vector_store %arg6[%c0_6, %c0_7], %8 {strides = array<i32>} : memref<2x16xf32, #tpu.memory_space<vmem>>, vector<2x16xf32>,
    return
  }
  func.func @transform_0(%arg0: i32, %arg1: i32, %arg2: i32) -> (i32, i32) {
    %c0_i32 = arith.constant 0 : i32
    return %arg0, %arg2 : i32, i32
  }
  func.func @transform_1(%arg0: i32, %arg1: i32, %arg2: i32) -> (i32, i32) {
    %c0_i32 = arith.constant 0 : i32
    return %arg2, %arg1 : i32, i32
  }
  func.func @transform_2(%arg0: i32, %arg1: i32, %arg2: i32) -> (i32, i32) {
    %c0_i32 = arith.constant 0 : i32
    %c0_i32_0 = arith.constant 0 : i32
    return %c0_i32, %arg1 : i32, i32
  }
  func.func @transform_3(%arg0: i32, %arg1: i32, %arg2: i32) -> (i32, i32) {
    %c0_i32 = arith.constant 0 : i32
    return %arg0, %arg1 : i32, i32
  }
}

</mosaic_0001>

<bundles_post_ra>
// kernel: model_wrapper_forward.1
= control target key start
LH: loop header
LB: loop body
LE: loop exit
PB: predicated region body
PF: predicated region fallthrough
CT: control target
= control target key end

     0   :  { %8 = vsyncpa [#allocation3], 0  ;;  %s278_s0 = inlined_call_operand.vmem [shape: f32[2,32], index: 0, kind: input, shape index: {}]   ;;  %s279_s1 = inlined_call_operand.hbm [shape: f32[32,32], index: 1, kind: input, shape index: {}]   ;;  %s280_s2 = inlined_call_operand.vmem [shape: f32[1,32], index: 2, kind: input, shape index: {}]   ;;  %s281_s3 = inlined_call_operand.hbm [shape: f32[2,16], index: 3, kind: output, shape index: {}]  }
   0x1   :  { %9 = vsyncpa [#allocation4], 0  ;;  %s219_s12 = smov [#allocation2]   ;;  %s171_s16 = scalar_lea.hbm %s279_s1, 512 }
   0x2   :  { %s17_s13 = sshll.u32 %s219_s12, 4  ;;  %p172_p0 = scmp.ne.s32.totalorder %s279_s1, %s171_s16  ;;  %s18_s13 = int_to_ptr.vmem [resolvable:$true] %s17_s13 }
   0x3   :  { %p175_p1 = scmp.lt.u32.totalorder %s171_s16, %s279_s1 }
   0x5   :  { %p177_p2 = pnand %p175_p1, %p172_p0 }
   0x7   :  { %180 = shalt.err (!%p177_p2)
}
   0x8   :  { %s181_s21 = scalar_lea.vmem %s18_s13, 512  ;;  %p186_p4 = scmp.lt.s32.totalorder %s18_s13, %s18_s13 }
   0x9   :  { %p182_p3 = scmp.ne.s32.totalorder %s18_s13, %s181_s21  ;;  %p187_p5 = scmp.lt.s32.totalorder %s181_s21, %s181_s21 }
   0xb   :  { %p188_p6 = por %p187_p5, %p186_p4 }
   0xd   :  { %p189_p7 = pnand %p188_p6, %p182_p3 }
   0xf   :  { %192 = shalt.err (!%p189_p7)
}
  0x10   :  { %s220_s22 = smov 128   ;;  %s221_s23 = smov 8  }
  0x11   :  { %23 = dma.hbm_to_vmem [thread:$0]  %s279_s1, 512, %s18_s13, [#allocation3], %s220_s22, %s220_s22, %s221_s23  }
  0x12   :  { %215 = dma.done.wait [#allocation3], 512  }
  0x13   :  { %216 = vsyncadd [#allocation3], 4294966784  ;;  %v222_v0 = vmov 0.0|0.0   ;;  %vm223_vm0 = vmmov 0   ;;  %v224_v1 = vmov 0.0   ;;  %vm40_vm1 = vcmask 123904  }
  0x14   :  { %158 = vmatprep.subr.bf16.mxu0 %v222_v0  ;;  %155 = vmatprep.mubr.msk.f32.mxu0 %vm223_vm0, %v224_v1  ;;  %v140_v2 = vld [vmem:[%s280_s2] ss:$0 sm:$0xff]  ;;  %v44_v4 = vld [vmem:[#allocation2 + $0x8] sm:$0xff]  ;;  %v45_v6 = vld [vmem:[#allocation2 + $0x10] sm:$0xff]  ;;  %vm47_vm2 = vcmask 261120   ;;  %s225_s29 = smov [#allocation5]  }
  0x15   :  { %v43_v3 = vld [vmem:[#allocation2] sm:$0xff]  ;;  %41 = vst.msk [vmem:[#allocation5] sm:$0x3] %vm40_vm1, %v140_v2  ;;  %v46_v7 = vld [vmem:[#allocation2 + $0x18] sm:$0xff]  ;;  %s131_s2 = sshll.u32 %s225_s29, 4  ;;  %s132_s2 = int_to_ptr.vmem [resolvable:$true] %s131_s2 }
  0x16   :  { %v159_v5 = vpack.c.bf16 %v44_v4, %v43_v3  ;;  %v162_v8 = vpack.c.bf16 %v46_v7, %v45_v6  ;;  %v42_v9 = vld [vmem:[%s278_s0] sm:$0x3]  ;;  %s193_s30 = scalar_lea.vmem %s132_s2, 32  ;;  %p198_p9 = scmp.lt.s32.totalorder %s132_s2, %s132_s2 }
  0x17   :  { %p194_p8 = scmp.ne.s32.totalorder %s132_s2, %s193_s30  ;;  %p199_p10 = scmp.lt.s32.totalorder %s193_s30, %s193_s30 }
  0x18   :  { %160 = vmatpush3.bf16.msra.mxu0 %v159_v5 }
  0x19   :  { %161 = vmatprep.subr.bf16.mxu0 %v222_v0  ;;  %p200_p11 = por %p199_p10, %p198_p9 }
  0x1b   :  { %p201_p12 = pnand %p200_p11, %p194_p8 }
  0x1c   :  { %163 = vmatpush3.bf16.msra.mxu0 %v162_v8  ;;  %v121_v10 = vld [vmem:[#allocation5] sm:$0x3] }
  0x1f   :  { %156 = vmatmul.mubr.msk.f32.vlgmr.msra.gmra.mrb[0].mxu0 %vm47_vm2, %v42_v9 }
  0xf2   :  { %v117_v11 = vpop.f32.mrb[0].mxu0 }
  0xf3   :  { %v122_v12 = vadd.f32 %v121_v10, %v117_v11  ;;  %v157_v13 = vpop.f32.mrb[1].mxu0 }
  0xf5   :  { %124 = vst.msk [vmem:[#allocation5] sm:$0x3] %vm40_vm1, %v122_v12 }
  0xf6   :  { %204 = shalt.err (!%p201_p12)
}
  0xf7   :  { %s205_s5 = scalar_lea.hbm %s281_s3, 32 }
  0xf8   :  { %p206_p13 = scmp.ne.s32.totalorder %s281_s3, %s205_s5  ;;  %p209_p0 = scmp.lt.u32.totalorder %s205_s5, %s281_s3 }
  0xfa   :  { %p211_p1 = pnand %p209_p0, %p206_p13 }
  0xfc   :  { %214 = shalt.err (!%p211_p1)
}
  0xfd   :  { %134 = dma.vmem_to_hbm [thread:$0]  %s132_s2, 32, %s281_s3, [#allocation4]  }
  0xfe   :  { %217 = dma.done.wait [#allocation4], 32  }
  0xff   :  { %218 = vsyncadd [#allocation4], 4294967264 }
 0x100   :  { %138 = vsyncpa [#allocation3], 1 }
 0x101   :  { %139 = vsyncpa [#allocation4], 1 }

</bundles_post_ra>
